<compile_context>
chip_gen: v7x
topology: tpu7x:2x2x1
jax: 0.10.0
libtpu: 0.0.40
codegen_flags: <defaults>
</compile_context>

<pallas_src>
import math
import jax
import jax.numpy as jnp
from jax import lax
from jax.experimental import pallas as pl
from jax.experimental.pallas import tpu as pltpu

_LANES = 128


def _mha_kernel_factory(n_heads, head_dim, model_dim):
    H, hd, D = n_heads, head_dim, model_dim

    def mha_kernel(x_ref, wqkv_ref, wo_ref, b_ref, o_ref):
        S = x_ref.shape[1]
        W3 = wqkv_ref.shape[1]          # lane-padded 3*D  (128 here)
        Dp = wo_ref.shape[2]            # lane-padded D    (128 here)

        x = x_ref[0]                                                # (S, D) bf16

        # Fused Q/K/V projection: one lane-dense MXU matmul, f32 accumulation.
        qkv = jnp.dot(x, wqkv_ref[...],
                      preferred_element_type=jnp.float32)           # (S, W3) f32
        qkv = (qkv + b_ref[0:1, 0:W3]).astype(jnp.bfloat16)

        # Per-head attention; the cross-head sum of the output projection is
        # accumulated into one f32 (S, Dp) tile (== merge_heads + w_o).
        out = jnp.zeros((S, Dp), jnp.float32)
        for h in range(H):                                          # static, H small
            q = qkv[:, h * hd:(h + 1) * hd]                         # (S, hd); scale folded in W
            k = qkv[:, D + h * hd:D + (h + 1) * hd]                 # (S, hd)
            v = qkv[:, 2 * D + h * hd:2 * D + (h + 1) * hd]         # (S, hd)

            # scores = q @ k^T (contraction over last dim of both operands)
            s = lax.dot_general(q, k, (((1,), (1,)), ((), ())),
                                preferred_element_type=jnp.float32)  # (S, S)
            m = jnp.max(s, axis=-1, keepdims=True)
            e = jnp.exp(s - m)                                       # unnormalized probs
            pv = jnp.dot(e.astype(jnp.bfloat16), v,
                         preferred_element_type=jnp.float32)         # (S, hd)
            # Deferred softmax normalization on the small PV result (EUP recip).
            pv = pv * pl.reciprocal(jnp.sum(e, axis=-1, keepdims=True),
                                    approx=True)
            # This head's slice of the output projection, accumulated over heads.
            out = out + jnp.dot(pv.astype(jnp.bfloat16), wo_ref[h],
                                preferred_element_type=jnp.float32)  # (S, Dp)

        out = out + b_ref[1:2, 0:Dp]
        o_ref[0] = out.astype(o_ref.dtype)

    return mha_kernel


def multi_head_attention(x, params, n_heads):
    """x: (B, S, D) float32.  params: input-major (D, D) weights (y = x @ W + b)
    and (1, D) biases, matching the PyTorch module's forward semantics."""
    B, S, D = x.shape
    assert D % n_heads == 0, "model_dim must be divisible by n_heads"
    head_dim = D // n_heads
    scale = 1.0 / math.sqrt(head_dim)

    # ---- host-side prep: fused / head-major / lane-padded / bf16 weights ----
    w_qkv = jnp.concatenate(
        [params["w_q"] * scale, params["w_k"], params["w_v"]], axis=1)    # (D, 3D)
    pad_qkv = (-w_qkv.shape[1]) % _LANES
    w_qkv = jnp.pad(w_qkv, ((0, 0), (0, pad_qkv))).astype(jnp.bfloat16)   # (D, W3)
    W3 = w_qkv.shape[1]

    pad_o = (-D) % _LANES
    Dp = D + pad_o
    w_o = jnp.pad(params["w_o"], ((0, 0), (0, pad_o)))                    # (D, Dp)
    w_o = w_o.reshape(n_heads, head_dim, Dp).astype(jnp.bfloat16)         # (H, hd, Dp)

    width = max(W3, Dp)
    b_qkv = jnp.concatenate(
        [params["b_q"][0] * scale, params["b_k"][0], params["b_v"][0]])   # (3D,)
    biases = jnp.stack([
        jnp.pad(b_qkv, (0, width - b_qkv.shape[0])),
        jnp.pad(params["b_o"][0], (0, width - D)),
    ]).astype(jnp.float32)                                                # (2, width)

    x_bf16 = x.astype(jnp.bfloat16)

    kernel = _mha_kernel_factory(n_heads, head_dim, D)

    # ---- cost estimate (weights are read once: their index maps are constant
    #      over the single batch grid axis) ----
    flops = B * (2 * S * D * W3                        # fused QKV projection
                 + n_heads * 2 * S * S * head_dim      # scores
                 + n_heads * 2 * S * S * head_dim      # PV
                 + n_heads * 2 * S * head_dim * Dp)    # head-summed output proj
    bytes_accessed = (B * S * D * 2                    # x (bf16)
                      + B * S * Dp * 4                 # padded f32 output
                      + D * W3 * 2                     # W_qkv (bf16)
                      + n_heads * head_dim * Dp * 2    # W_o (bf16)
                      + 2 * width * 4)                 # packed biases (f32)
    cost = pl.CostEstimate(flops=flops,
                           transcendentals=B * n_heads * S * (S + 1),
                           bytes_accessed=bytes_accessed)

    out_padded = pl.pallas_call(
        kernel,
        out_shape=jax.ShapeDtypeStruct((B, S, Dp), x.dtype),
        grid_spec=pltpu.PrefetchScalarGridSpec(
            num_scalar_prefetch=0,
            grid=(B,),
            in_specs=[
                pl.BlockSpec((1, S, D), lambda b: (b, 0, 0)),                 # x
                pl.BlockSpec((D, W3), lambda b: (0, 0)),                      # W_qkv
                pl.BlockSpec((n_heads, head_dim, Dp), lambda b: (0, 0, 0)),   # W_o
                pl.BlockSpec((2, width), lambda b: (0, 0)),                   # biases
            ],
            out_specs=pl.BlockSpec((1, S, Dp), lambda b: (b, 0, 0)),
        ),
        compiler_params=pltpu.CompilerParams(
            dimension_semantics=("parallel",)),
        cost_estimate=cost,
    )(x_bf16, w_qkv, w_o, biases)

    # Kernel writes lane-dense 128-wide tiles; slice back to model_dim outside.
    return out_padded[:, :, :D]


def reference_mha(x, params, n_heads):
    """Plain-JAX f32 reference matching the PyTorch forward semantics."""
    B, S, D = x.shape
    hd = D // n_heads

    def proj(t, w, b):
        return jnp.einsum("bsd,de->bse", t, w) + b[0]

    def split(t):  # (B, S, D) -> (B, H, S, hd)
        return t.reshape(B, S, n_heads, hd).transpose(0, 2, 1, 3)

    Q = split(proj(x, params["w_q"], params["b_q"]))
    K = split(proj(x, params["w_k"], params["b_k"]))
    V = split(proj(x, params["w_v"], params["b_v"]))
    scores = jnp.einsum("bhqd,bhkd->bhqk", Q, K) / math.sqrt(hd)
    probs = jax.nn.softmax(scores, axis=-1)
    out = jnp.einsum("bhqk,bhkd->bhqd", probs, V)
    merged = out.transpose(0, 2, 1, 3).reshape(B, S, D)
    return proj(merged, params["w_o"], params["b_o"])


if __name__ == "__main__":
    B, S, D, H = 2, 8, 32, 4

    key = jax.random.PRNGKey(0)
    keys = jax.random.split(key, 9)
    x = jax.random.normal(keys[0], (B, S, D), dtype=jnp.float32)

    def lin_init(kw, kb):
        # deterministic synthetic init, roughly nn.Linear's uniform range
        bound = 1.0 / math.sqrt(D)
        w = jax.random.uniform(kw, (D, D), jnp.float32, -bound, bound)
        b = jax.random.uniform(kb, (1, D), jnp.float32, -bound, bound)
        return w, b

    params = {}
    params["w_q"], params["b_q"] = lin_init(keys[1], keys[2])
    params["w_k"], params["b_k"] = lin_init(keys[3], keys[4])
    params["w_v"], params["b_v"] = lin_init(keys[5], keys[6])
    params["w_o"], params["b_o"] = lin_init(keys[7], keys[8])

    out = multi_head_attention(x, params, H)
    out = jax.block_until_ready(out)

    ref = reference_mha(x, params, H)
    assert out.shape == (B, S, D)
    # bf16 MXU inputs (incl. x) with f32 accumulation + approx reciprocal
    # -> looser tolerance vs the pure-f32 reference.
    assert jnp.allclose(out, ref, atol=3e-2, rtol=3e-2), \
        float(jnp.max(jnp.abs(out - ref)))

    print("KERNEL_OK")
</pallas_src>

<mosaic_0001>
module attributes {stable_mosaic.version = 11 : i64} {
  func.func @mha_kernel(%arg0: i32, %arg1: memref<1x8x32xbf16, #tpu.memory_space<vmem>>, %arg2: memref<32x128xbf16, #tpu.memory_space<vmem>>, %arg3: memref<4x8x128xbf16, #tpu.memory_space<vmem>>, %arg4: memref<2x128xf32, #tpu.memory_space<vmem>>, %arg5: memref<1x8x128xf32, #tpu.memory_space<vmem>>) attributes {dimension_semantics = [#tpu.dimension_semantics<parallel>], iteration_bounds = array<i64: 2>, scalar_prefetch = 0 : i64, scratch_operands = 0 : i64, tpu.core_type = #tpu.core_type<tc>, window_params = [{transform_indices = @transform_0, window_bounds = array<i64: 1, 8, 32>}, {pipeline_mode = #tpu.pipeline_mode<synchronous>, transform_indices = @transform_1, window_bounds = array<i64: 32, 128>}, {pipeline_mode = #tpu.pipeline_mode<synchronous>, transform_indices = @transform_2, window_bounds = array<i64: 4, 8, 128>}, {pipeline_mode = #tpu.pipeline_mode<synchronous>, transform_indices = @transform_3, window_bounds = array<i64: 2, 128>}, {transform_indices = @transform_4, window_bounds = array<i64: 1, 8, 128>}]} {
    %c0 = arith.constant 0 : index
    %c0_0 = arith.constant 0 : index
    %c0_1 = arith.constant 0 : index
    %0 = vector.load %arg1[%c0, %c0_0, %c0_1] : memref<1x8x32xbf16, #tpu.memory_space<vmem>>, vector<1x8x32xbf16>
    %1 = vector.shape_cast %0 : vector<1x8x32xbf16> to vector<8x32xbf16>
    %c0_2 = arith.constant 0 : index
    %c0_3 = arith.constant 0 : index
    %2 = vector.load %arg2[%c0_2, %c0_3] : memref<32x128xbf16, #tpu.memory_space<vmem>>, vector<32x128xbf16>
    %cst = arith.constant dense<0.000000e+00> : vector<8x128xf32>
    %3 = tpu.matmul %1, %2, %cst {dimension_numbers = #tpu.dot_dimension_numbers<[1], [0], [0], [1], [0, 0, 1, 1], [], []>} : vector<8x32xbf16>, vector<32x128xbf16>, vector<8x128xf32> -> vector<8x128xf32>
    %c0_4 = arith.constant 0 : index
    %c0_5 = arith.constant 0 : index
    %4 = vector.load %arg4[%c0_4, %c0_5] : memref<2x128xf32, #tpu.memory_space<vmem>>, vector<1x128xf32>
    %5 = vector.broadcast %4 : vector<1x128xf32> to vector<8x128xf32>
    %6 = arith.addf %3, %5 : vector<8x128xf32>
    %7 = arith.truncf %6 : vector<8x128xf32> to vector<8x128xbf16>
    %cst_6 = arith.constant 0.000000e+00 : f32
    %8 = vector.broadcast %cst_6 : f32 to vector<8x128xf32>
    %9 = vector.extract_strided_slice %7 {offsets = [0, 0], sizes = [8, 8], strides = [1, 1]} : vector<8x128xbf16> to vector<8x8xbf16>
    %10 = vector.extract_strided_slice %7 {offsets = [0, 32], sizes = [8, 8], strides = [1, 1]} : vector<8x128xbf16> to vector<8x8xbf16>
    %11 = vector.extract_strided_slice %7 {offsets = [0, 64], sizes = [8, 8], strides = [1, 1]} : vector<8x128xbf16> to vector<8x8xbf16>
    %cst_7 = arith.constant dense<0.000000e+00> : vector<8x8xf32>
    %12 = tpu.matmul %9, %10, %cst_7 {dimension_numbers = #tpu.dot_dimension_numbers<[1], [1], [0], [0], [0, 0, 1, 0], [], []>} : vector<8x8xbf16>, vector<8x8xbf16>, vector<8x8xf32> -> vector<8x8xf32>
    %cst_8 = arith.constant dense<0xFF800000> : vector<8xf32>
    %13 = vector.multi_reduction <maximumf>, %12, %cst_8 [1] : vector<8x8xf32> to vector<8xf32>
    %14 = vector.shape_cast %13 : vector<8xf32> to vector<8x1xf32>
    %15 = vector.broadcast %14 : vector<8x1xf32> to vector<8x8xf32>
    %16 = arith.subf %12, %15 : vector<8x8xf32>
    %17 = math.exp %16 : vector<8x8xf32>
    %18 = arith.truncf %17 : vector<8x8xf32> to vector<8x8xbf16>
    %cst_9 = arith.constant dense<0.000000e+00> : vector<8x8xf32>
    %19 = tpu.matmul %18, %11, %cst_9 {dimension_numbers = #tpu.dot_dimension_numbers<[1], [0], [0], [1], [0, 0, 1, 1], [], []>} : vector<8x8xbf16>, vector<8x8xbf16>, vector<8x8xf32> -> vector<8x8xf32>
    %cst_10 = arith.constant dense<0.000000e+00> : vector<8xf32>
    %20 = vector.multi_reduction <add>, %17, %cst_10 [1] : vector<8x8xf32> to vector<8xf32>
    %21 = vector.shape_cast %20 : vector<8xf32> to vector<8x1xf32>
    %22 = tpu.reciprocal %21 {approx = true} : vector<8x1xf32> -> vector<8x1xf32>
    %23 = vector.broadcast %22 : vector<8x1xf32> to vector<8x8xf32>
    %24 = arith.mulf %19, %23 : vector<8x8xf32>
    %25 = arith.truncf %24 : vector<8x8xf32> to vector<8x8xbf16>
    %c0_11 = arith.constant 0 : index
    %c0_12 = arith.constant 0 : index
    %c0_13 = arith.constant 0 : index
    %26 = vector.load %arg3[%c0_11, %c0_12, %c0_13] : memref<4x8x128xbf16, #tpu.memory_space<vmem>>, vector<1x8x128xbf16>
    %27 = vector.shape_cast %26 : vector<1x8x128xbf16> to vector<8x128xbf16>
    %cst_14 = arith.constant dense<0.000000e+00> : vector<8x128xf32>
    %28 = tpu.matmul %25, %27, %cst_14 {dimension_numbers = #tpu.dot_dimension_numbers<[1], [0], [0], [1], [0, 0, 1, 1], [], []>} : vector<8x8xbf16>, vector<8x128xbf16>, vector<8x128xf32> -> vector<8x128xf32>
    %29 = arith.addf %8, %28 : vector<8x128xf32>
    %30 = vector.extract_strided_slice %7 {offsets = [0, 8], sizes = [8, 8], strides = [1, 1]} : vector<8x128xbf16> to vector<8x8xbf16>
    %31 = vector.extract_strided_slice %7 {offsets = [0, 40], sizes = [8, 8], strides = [1, 1]} : vector<8x128xbf16> to vector<8x8xbf16>
    %32 = vector.extract_strided_slice %7 {offsets = [0, 72], sizes = [8, 8], strides = [1, 1]} : vector<8x128xbf16> to vector<8x8xbf16>
    %cst_15 = arith.constant dense<0.000000e+00> : vector<8x8xf32>
    %33 = tpu.matmul %30, %31, %cst_15 {dimension_numbers = #tpu.dot_dimension_numbers<[1], [1], [0], [0], [0, 0, 1, 0], [], []>} : vector<8x8xbf16>, vector<8x8xbf16>, vector<8x8xf32> -> vector<8x8xf32>
    %cst_16 = arith.constant dense<0xFF800000> : vector<8xf32>
    %34 = vector.multi_reduction <maximumf>, %33, %cst_16 [1] : vector<8x8xf32> to vector<8xf32>
    %35 = vector.shape_cast %34 : vector<8xf32> to vector<8x1xf32>
    %36 = vector.broadcast %35 : vector<8x1xf32> to vector<8x8xf32>
    %37 = arith.subf %33, %36 : vector<8x8xf32>
    %38 = math.exp %37 : vector<8x8xf32>
    %39 = arith.truncf %38 : vector<8x8xf32> to vector<8x8xbf16>
    %cst_17 = arith.constant dense<0.000000e+00> : vector<8x8xf32>
    %40 = tpu.matmul %39, %32, %cst_17 {dimension_numbers = #tpu.dot_dimension_numbers<[1], [0], [0], [1], [0, 0, 1, 1], [], []>} : vector<8x8xbf16>, vector<8x8xbf16>, vector<8x8xf32> -> vector<8x8xf32>
    %cst_18 = arith.constant dense<0.000000e+00> : vector<8xf32>
    %41 = vector.multi_reduction <add>, %38, %cst_18 [1] : vector<8x8xf32> to vector<8xf32>
    %42 = vector.shape_cast %41 : vector<8xf32> to vector<8x1xf32>
    %43 = tpu.reciprocal %42 {approx = true} : vector<8x1xf32> -> vector<8x1xf32>
    %44 = vector.broadcast %43 : vector<8x1xf32> to vector<8x8xf32>
    %45 = arith.mulf %40, %44 : vector<8x8xf32>
    %46 = arith.truncf %45 : vector<8x8xf32> to vector<8x8xbf16>
    %c1 = arith.constant 1 : index
    %c0_19 = arith.constant 0 : index
    %c0_20 = arith.constant 0 : index
    %47 = vector.load %arg3[%c1, %c0_19, %c0_20] : memref<4x8x128xbf16, #tpu.memory_space<vmem>>, vector<1x8x128xbf16>
    %48 = vector.shape_cast %47 : vector<1x8x128xbf16> to vector<8x128xbf16>
    %cst_21 = arith.constant dense<0.000000e+00> : vector<8x128xf32>
    %49 = tpu.matmul %46, %48, %cst_21 {dimension_numbers = #tpu.dot_dimension_numbers<[1], [0], [0], [1], [0, 0, 1, 1], [], []>} : vector<8x8xbf16>, vector<8x128xbf16>, vector<8x128xf32> -> vector<8x128xf32>
    %50 = arith.addf %29, %49 : vector<8x128xf32>
    %51 = vector.extract_strided_slice %7 {offsets = [0, 16], sizes = [8, 8], strides = [1, 1]} : vector<8x128xbf16> to vector<8x8xbf16>
    %52 = vector.extract_strided_slice %7 {offsets = [0, 48], sizes = [8, 8], strides = [1, 1]} : vector<8x128xbf16> to vector<8x8xbf16>
    %53 = vector.extract_strided_slice %7 {offsets = [0, 80], sizes = [8, 8], strides = [1, 1]} : vector<8x128xbf16> to vector<8x8xbf16>
    %cst_22 = arith.constant dense<0.000000e+00> : vector<8x8xf32>
    %54 = tpu.matmul %51, %52, %cst_22 {dimension_numbers = #tpu.dot_dimension_numbers<[1], [1], [0], [0], [0, 0, 1, 0], [], []>} : vector<8x8xbf16>, vector<8x8xbf16>, vector<8x8xf32> -> vector<8x8xf32>
    %cst_23 = arith.constant dense<0xFF800000> : vector<8xf32>
    %55 = vector.multi_reduction <maximumf>, %54, %cst_23 [1] : vector<8x8xf32> to vector<8xf32>
    %56 = vector.shape_cast %55 : vector<8xf32> to vector<8x1xf32>
    %57 = vector.broadcast %56 : vector<8x1xf32> to vector<8x8xf32>
    %58 = arith.subf %54, %57 : vector<8x8xf32>
    %59 = math.exp %58 : vector<8x8xf32>
    %60 = arith.truncf %59 : vector<8x8xf32> to vector<8x8xbf16>
    %cst_24 = arith.constant dense<0.000000e+00> : vector<8x8xf32>
    %61 = tpu.matmul %60, %53, %cst_24 {dimension_numbers = #tpu.dot_dimension_numbers<[1], [0], [0], [1], [0, 0, 1, 1], [], []>} : vector<8x8xbf16>, vector<8x8xbf16>, vector<8x8xf32> -> vector<8x8xf32>
    %cst_25 = arith.constant dense<0.000000e+00> : vector<8xf32>
    %62 = vector.multi_reduction <add>, %59, %cst_25 [1] : vector<8x8xf32> to vector<8xf32>
    %63 = vector.shape_cast %62 : vector<8xf32> to vector<8x1xf32>
    %64 = tpu.reciprocal %63 {approx = true} : vector<8x1xf32> -> vector<8x1xf32>
    %65 = vector.broadcast %64 : vector<8x1xf32> to vector<8x8xf32>
    %66 = arith.mulf %61, %65 : vector<8x8xf32>
    %67 = arith.truncf %66 : vector<8x8xf32> to vector<8x8xbf16>
    %c2 = arith.constant 2 : index
    %c0_26 = arith.constant 0 : index
    %c0_27 = arith.constant 0 : index
    %68 = vector.load %arg3[%c2, %c0_26, %c0_27] : memref<4x8x128xbf16, #tpu.memory_space<vmem>>, vector<1x8x128xbf16>
    %69 = vector.shape_cast %68 : vector<1x8x128xbf16> to vector<8x128xbf16>
    %cst_28 = arith.constant dense<0.000000e+00> : vector<8x128xf32>
    %70 = tpu.matmul %67, %69, %cst_28 {dimension_numbers = #tpu.dot_dimension_numbers<[1], [0], [0], [1], [0, 0, 1, 1], [], []>} : vector<8x8xbf16>, vector<8x128xbf16>, vector<8x128xf32> -> vector<8x128xf32>
    %71 = arith.addf %50, %70 : vector<8x128xf32>
    %72 = vector.extract_strided_slice %7 {offsets = [0, 24], sizes = [8, 8], strides = [1, 1]} : vector<8x128xbf16> to vector<8x8xbf16>
    %73 = vector.extract_strided_slice %7 {offsets = [0, 56], sizes = [8, 8], strides = [1, 1]} : vector<8x128xbf16> to vector<8x8xbf16>
    %74 = vector.extract_strided_slice %7 {offsets = [0, 88], sizes = [8, 8], strides = [1, 1]} : vector<8x128xbf16> to vector<8x8xbf16>
    %cst_29 = arith.constant dense<0.000000e+00> : vector<8x8xf32>
    %75 = tpu.matmul %72, %73, %cst_29 {dimension_numbers = #tpu.dot_dimension_numbers<[1], [1], [0], [0], [0, 0, 1, 0], [], []>} : vector<8x8xbf16>, vector<8x8xbf16>, vector<8x8xf32> -> vector<8x8xf32>
    %cst_30 = arith.constant dense<0xFF800000> : vector<8xf32>
    %76 = vector.multi_reduction <maximumf>, %75, %cst_30 [1] : vector<8x8xf32> to vector<8xf32>
    %77 = vector.shape_cast %76 : vector<8xf32> to vector<8x1xf32>
    %78 = vector.broadcast %77 : vector<8x1xf32> to vector<8x8xf32>
    %79 = arith.subf %75, %78 : vector<8x8xf32>
    %80 = math.exp %79 : vector<8x8xf32>
    %81 = arith.truncf %80 : vector<8x8xf32> to vector<8x8xbf16>
    %cst_31 = arith.constant dense<0.000000e+00> : vector<8x8xf32>
    %82 = tpu.matmul %81, %74, %cst_31 {dimension_numbers = #tpu.dot_dimension_numbers<[1], [0], [0], [1], [0, 0, 1, 1], [], []>} : vector<8x8xbf16>, vector<8x8xbf16>, vector<8x8xf32> -> vector<8x8xf32>
    %cst_32 = arith.constant dense<0.000000e+00> : vector<8xf32>
    %83 = vector.multi_reduction <add>, %80, %cst_32 [1] : vector<8x8xf32> to vector<8xf32>
    %84 = vector.shape_cast %83 : vector<8xf32> to vector<8x1xf32>
    %85 = tpu.reciprocal %84 {approx = true} : vector<8x1xf32> -> vector<8x1xf32>
    %86 = vector.broadcast %85 : vector<8x1xf32> to vector<8x8xf32>
    %87 = arith.mulf %82, %86 : vector<8x8xf32>
    %88 = arith.truncf %87 : vector<8x8xf32> to vector<8x8xbf16>
    %c3 = arith.constant 3 : index
    %c0_33 = arith.constant 0 : index
    %c0_34 = arith.constant 0 : index
    %89 = vector.load %arg3[%c3, %c0_33, %c0_34] : memref<4x8x128xbf16, #tpu.memory_space<vmem>>, vector<1x8x128xbf16>
    %90 = vector.shape_cast %89 : vector<1x8x128xbf16> to vector<8x128xbf16>
    %cst_35 = arith.constant dense<0.000000e+00> : vector<8x128xf32>
    %91 = tpu.matmul %88, %90, %cst_35 {dimension_numbers = #tpu.dot_dimension_numbers<[1], [0], [0], [1], [0, 0, 1, 1], [], []>} : vector<8x8xbf16>, vector<8x128xbf16>, vector<8x128xf32> -> vector<8x128xf32>
    %92 = arith.addf %71, %91 : vector<8x128xf32>
    %c1_36 = arith.constant 1 : index
    %c0_37 = arith.constant 0 : index
    %93 = vector.load %arg4[%c1_36, %c0_37] : memref<2x128xf32, #tpu.memory_space<vmem>>, vector<1x128xf32>
    %94 = vector.broadcast %93 : vector<1x128xf32> to vector<8x128xf32>
    %95 = arith.addf %92, %94 : vector<8x128xf32>
    %c0_38 = arith.constant 0 : index
    %c0_39 = arith.constant 0 : index
    %c0_40 = arith.constant 0 : index
    %96 = vector.load %arg5[%c0_38, %c0_39, %c0_40] : memref<1x8x128xf32, #tpu.memory_space<vmem>>, vector<1x8x128xf32>
    %97 = vector.shape_cast %96 : vector<1x8x128xf32> to vector<8x128xf32>
    %98 = vector.shape_cast %95 : vector<8x128xf32> to vector<1x8x128xf32>
    tpu.vector_store %arg5[%c0_38, %c0_39, %c0_40], %98 {strides = array<i32>} : memref<1x8x128xf32, #tpu.memory_space<vmem>>, vector<1x8x128xf32>,
    return
  }
  func.func @transform_0(%arg0: i32) -> (i32, i32, i32) {
    %c0_i32 = arith.constant 0 : i32
    %c0_i32_0 = arith.constant 0 : i32
    %c0_i32_1 = arith.constant 0 : i32
    return %arg0, %c0_i32, %c0_i32_0 : i32, i32, i32
  }
  func.func @transform_1(%arg0: i32) -> (i32, i32) {
    %c0_i32 = arith.constant 0 : i32
    %c0_i32_0 = arith.constant 0 : i32
    %c0_i32_1 = arith.constant 0 : i32
    return %c0_i32, %c0_i32_0 : i32, i32
  }
  func.func @transform_2(%arg0: i32) -> (i32, i32, i32) {
    %c0_i32 = arith.constant 0 : i32
    %c0_i32_0 = arith.constant 0 : i32
    %c0_i32_1 = arith.constant 0 : i32
    %c0_i32_2 = arith.constant 0 : i32
    return %c0_i32, %c0_i32_0, %c0_i32_1 : i32, i32, i32
  }
  func.func @transform_3(%arg0: i32) -> (i32, i32) {
    %c0_i32 = arith.constant 0 : i32
    %c0_i32_0 = arith.constant 0 : i32
    %c0_i32_1 = arith.constant 0 : i32
    return %c0_i32, %c0_i32_0 : i32, i32
  }
  func.func @transform_4(%arg0: i32) -> (i32, i32, i32) {
    %c0_i32 = arith.constant 0 : i32
    %c0_i32_0 = arith.constant 0 : i32
    %c0_i32_1 = arith.constant 0 : i32
    return %arg0, %c0_i32, %c0_i32_0 : i32, i32, i32
  }
}

</mosaic_0001>

<bundles_post_ra>
// kernel: tpu_custom_call.1
= control target key start
LH: loop header
LB: loop body
LE: loop exit
PB: predicated region body
PF: predicated region fallthrough
CT: control target
= control target key end

     0   :  { %9 = vsyncpa [#allocation3], 0  ;;  %s1825_s0 = inlined_call_operand.hbm [shape: bf16[2,8,32], index: 0, kind: input, shape index: {}]   ;;  %s1826_s1 = inlined_call_operand.hbm [shape: bf16[32,128], index: 1, kind: input, shape index: {}]   ;;  %s1827_s2 = inlined_call_operand.hbm [shape: bf16[4,8,128], index: 2, kind: input, shape index: {}]   ;;  %s1828_s3 = inlined_call_operand.vmem [shape: f32[2,128], index: 3, kind: input, shape index: {}]   ;;  %s1829_s4 = inlined_call_operand.hbm [shape: f32[2,8,128], index: 4, kind: output, shape index: {}]  }
   0x1   :  { %11 = vsyncpa [#allocation3 + $0x1], 0 }
   0x2   :  { %12 = vsyncpa [#allocation6], 0 }
   0x3   :  { %13 = vsyncpa [#allocation4], 0 }
   0x4   :  { %15 = vsyncpa [#allocation4 + $0x1], 0  ;;  %s1500_s15 = smov 0   ;;  %s1502_s16 = smov 0  }
   0x5   :  { %s1504_s17 = smov 0   ;;  %s1506_s18 = smov 0  }
   0x6 LB: > { %s1521_s19 = sadd.s32 4294967295, %s1454_s18   ;;  %s1058_s20 = sadd.s32 4294967294, %s1454_s18   ;;  %s1454_s18 = sphi %s1506_s18, %s1849_s18   ;;  %s1450_s17 = sphi %s1504_s17, %s1848_s17   ;;  %s1446_s16 = sphi %s1502_s16, %s1847_s16   ;;  %s1442_s15 = sphi %s1500_s15, %s1846_s15  }
   0x7   : > { %p41_p0 = scmp.ne.s32.totalorder %s1446_s16, %s1442_s15  ;;  %p1830_p1 = scmp.eq.s32.totalorder %s1521_s19, 0 }
   0x8   : > { %p134_p3 = scmp.eq.s32.totalorder %s1058_s20, 1  ;;  %p1059_p5 = scmp.ge.s32.totalorder %s1454_s18, 1 }
   0x9   : > { %p1530_p4 = por %p1830_p1, %p41_p0  ;;  %p141_p7 = scmp.lt.s32.totalorder %s1454_s18, 3 }
   0xa   : > { %p1535_p6 = por %p134_p3, %p41_p0  ;;  %s1456_s24 = smov [#allocation5]  }
   0xb   : > { %s1833_s21 = scalar_select %p1530_p4, 1, 0 }
   0xc   : > { %s1834_s22 = scalar_select %p1535_p6, 1, 0 }
   0xd   : > { %p1540_p8 = pnand %p1059_p5, %p141_p7  ;;  %s153_s25 = sshll.u32 %s1456_s24, 4  ;;  %s1544_s25 = int_to_ptr.vmem [resolvable:$true] %s153_s25 }
   0xe   : > { %s1457_s27 = smov [#allocation7]   ;;  %s1298_s5 = scalar_lea.hbm %s1826_s1, 256 }
   0xf   : > { %p1210_p9 = pneg %p1540_p8  ;;  %s166_s28 = sshll.u32 %s1457_s27, 4  ;;  %s1555_s28 = int_to_ptr.vmem [resolvable:$true] %s166_s28 }
  0x10   : > { %p1299_p12 = scmp.ne.s32.totalorder %s1826_s1, %s1298_s5  ;;  %p1305_p5 = scmp.lt.u32.totalorder %s1298_s5, %s1826_s1 }
  0x11   : > { %p1551_p11 = pnand %p1210_p9, %p1830_p1 }
  0x13   : > { %p1300_p13 = pneg %p1551_p11 }
  0x15   : > { %p1301_p0 = pnand %p1300_p13, %p1299_p12 }
  0x17   : > { %p1302_p3 = pneg %p1301_p0 }
  0x19   : > { %p1307_p7 = pnand %p1305_p5, %p1302_p3 }
  0x1b   : > { %1310 = shalt.err (!%p1307_p7)
}
  0x1c   : > { %s1311_s10 = scalar_lea.vmem %s1544_s25, 256  ;;  %p1319_p2 = scmp.lt.s32.totalorder %s1544_s25, %s1544_s25 }
  0x1d   : > { %p1312_p9 = scmp.ne.s32.totalorder %s1544_s25, %s1311_s10  ;;  %p1320_p12 = scmp.lt.s32.totalorder %s1311_s10, %s1311_s10 }
  0x1f   : > { %p1314_p10 = pnand %p1312_p9, %p1300_p13  ;;  %p1321_p0 = por %p1320_p12, %p1319_p2 }
  0x21   : > { %p1315_p1 = pneg %p1314_p10 }
  0x23   : > { %p1322_p6 = pnand %p1321_p0, %p1315_p1 }
  0x25   : > { %1325 = shalt.err (!%p1322_p6)
}
  0x26   : > { %s1458_s11 = smov 64   ;;  %s1459_s12 = smov 4  }
  0x27   : > { %1213 = dma.hbm_to_vmem [thread:$0]  (!%p1551_p11), %s1826_s1, 256, %s1544_s25, [#allocation6], %s1458_s11, %s1458_s11, %s1459_s12  }
  0x28   : > { %s1326_s27 = scalar_lea.hbm %s1827_s2, 256 }
  0x29   : > { %p1327_p2 = scmp.ne.s32.totalorder %s1827_s2, %s1326_s27  ;;  %p1333_p10 = scmp.lt.u32.totalorder %s1326_s27, %s1827_s2 }
  0x2b   : > { %p1329_p1 = pnand %p1327_p2, %p1300_p13 }
  0x2d   : > { %p1330_p6 = pneg %p1329_p1 }
  0x2f   : > { %p1335_p3 = pnand %p1333_p10, %p1330_p6 }
  0x31   : > { %1338 = shalt.err (!%p1335_p3)
}
  0x32   : > { %s1339_s25 = scalar_lea.vmem %s1555_s28, 256  ;;  %p1347_p12 = scmp.lt.s32.totalorder %s1555_s28, %s1555_s28 }
  0x33   : > { %p1340_p5 = scmp.ne.s32.totalorder %s1555_s28, %s1339_s25  ;;  %p1348_p0 = scmp.lt.s32.totalorder %s1339_s25, %s1339_s25 }
  0x35   : > { %p1342_p7 = pnand %p1340_p5, %p1300_p13  ;;  %p1349_p2 = por %p1348_p0, %p1347_p12 }
  0x37   : > { %p1343_p9 = pneg %p1342_p7 }
  0x39   : > { %p1350_p1 = pnand %p1349_p2, %p1343_p9 }
  0x3b   : > { %1353 = shalt.err (!%p1350_p1)
}
  0x3c   : > { %1216 = dma.hbm_to_vmem [thread:$0]  (!%p1551_p11), %s1827_s2, 256, %s1555_s28, [#allocation6], %s1458_s11, %s1458_s11, %s1459_s12  }
  0x3d   : > { %s1610_s9 = sadd.s32 1, %s1454_s18   ;;  %s28_s26 = sadd.s32 1, %s1450_s17 }
  0x3e   : > { %s25_s10 = ssub.s32 %s1454_s18, %s1610_s9  ;;  %p35_p13 = scmp.ne.s32.totalorder %s1450_s17, %s1446_s16 }
  0x3f   : > { %p26_p6 = scmp.eq.s32.totalorder %s25_s10, 0  ;;  %p36_p10 = scmp.eq.s32.totalorder %s1454_s18, 0 }
  0x40   : > { %p1837_p3 = scmp.eq.s32.totalorder %s1521_s19, 1  ;;  %p1227_p7 = scmp.lt.s32.totalorder %s1454_s18, 2 }
  0x41   : > { %s1626_s14 = scalar_select %p26_p6, %s1450_s17, %s28_s26  }
  0x42   : > { %p1620_p5 = por %p1837_p3, %p35_p13  ;;  %p37_p9 = por %p36_p10, %p35_p13 }
  0x43   : > { %s183_s20 = sand.u32 1, %s1450_s17   ;;  %s1064_s28 = sshll.u32 %s1454_s18, 6 }
  0x44   : > { %s1838_s13 = scalar_select %p1620_p5, 1, 0 }
  0x45   : > { %s1063_s24 = sshll.u32 %s183_s20, 2  ;;  %s1633_s27 = scalar_lea.hbm %s1825_s0, %s1064_s28 }
  0x46   : > { %s187_s29 = scalar_lea.vmem [#allocation2], %s1063_s24  ;;  %p1637_p11 = pnand %p1227_p7, %p37_p9 }
  0x47   : > { %s194_s30 = sshll.u32 %s187_s29, 4  ;;  %s184_s6 = scalar_lea.sflag [#allocation3], %s183_s20  ;;  %s1635_s30 = int_to_ptr.vmem [resolvable:$true] %s194_s30 }
  0x48   : > { %s1354_s25 = scalar_lea.hbm %s1633_s27, 64  ;;  %p1356_p0 = pneg %p1637_p11 }
  0x49   : > { %p1355_p12 = scmp.ne.s32.totalorder %s1633_s27, %s1354_s25  ;;  %s1359_s26 = scalar_lea.hbm %s1825_s0, 128 }
  0x4a   : > { %p1360_p13 = scmp.lt.u32.totalorder %s1633_s27, %s1825_s0  ;;  %p1361_p6 = scmp.lt.u32.totalorder %s1359_s26, %s1354_s25 }
  0x4b   : > { %p1357_p2 = pnand %p1356_p0, %p1355_p12  ;;  %p1363_p3 = scmp.lt.u32.totalorder %s1354_s25, %s1633_s27 }
  0x4c   : > { %p1362_p10 = por %p1361_p6, %p1360_p13 }
  0x4d   : > { %p1358_p1 = pneg %p1357_p2 }
  0x4e   : > { %p1364_p7 = por %p1363_p3, %p1362_p10 }
  0x50   : > { %p1365_p9 = pnand %p1364_p7, %p1358_p1 }
  0x52   : > { %1368 = shalt.err (!%p1365_p9)
}
  0x53   : > { %s1369_s20 = scalar_lea.vmem %s1635_s30, 64  ;;  %s1460_s28 = smov [#allocation2]  }
  0x54   : > { %p1370_p12 = scmp.ne.s32.totalorder %s1635_s30, %s1369_s20  ;;  %s1374_s11 = sshll.u32 %s1460_s28, 4  ;;  %s1375_s11 = int_to_ptr.vmem [resolvable:$false] %s1374_s11 }
  0x55   : > { %s1376_s12 = scalar_lea.vmem %s1375_s11, 128  ;;  %p1377_p4 = scmp.lt.s32.totalorder %s1635_s30, %s1375_s11 }
  0x56   : > { %p1372_p2 = pnand %p1370_p12, %p1356_p0  ;;  %p1378_p13 = scmp.lt.s32.totalorder %s1376_s12, %s1369_s20 }
  0x58   : > { %p1373_p5 = pneg %p1372_p2  ;;  %p1379_p6 = por %p1378_p13, %p1377_p4 }
  0x5a   : > { %p1380_p10 = pnand %p1379_p6, %p1373_p5 }
  0x5c   : > { %1383 = shalt.err (!%p1380_p10)
}
  0x5d   : > { %1220 = dma.hbm_to_vmem [thread:$0]  (!%p1637_p11), %s1633_s27, 64, %s1635_s30, %s184_s6  }
  0x5e   : > { %203 = sbr.rel (%p1540_p8) target bundleno = 2256 (0x8d0), region = 36  ;;  %s1669_s29 = sand.u32 (!%p1540_p8), 1, %s1446_s16  }
  0x5f   : > { %s1066_s25 = sshll.u32 (!%p1540_p8), %s1669_s29, 2  ;;  %s206_s7 = scalar_lea.sflag (!%p1540_p8), [#allocation3], %s1669_s29 }
  0x60   : > { %s209_s8 = scalar_lea.vmem (!%p1540_p8), [#allocation2], %s1066_s25  ;;  %p1840_p4 = scmp.ne.s32.totalorder (!%p1540_p8), %s1833_s21, 0 }
  0x65   : > { %1429 = dma.done.wait (%p1840_p4), %s206_s7, 64  }
  0x66   : > { %1431 = vsyncadd (%p1840_p4), %s206_s7, 4294967232  ;;  %p1841_p5 = scmp.eq.s32.totalorder %s1521_s19, 0 }
  0x68   : > { %1433 = dma.done.wait (%p1841_p5), [#allocation6], 512   ;;  %p1842_p11 = pmov %p1841_p5 }
  0x69   : > { %v1461_v0 = vmov 0.0   ;;  %vm1462_vm0 = vmmov 0   ;;  %v1280_v1 = vld [vmem:[#allocation5] sm:$0xff]   ;;  %v1281_v2 = vld [vmem:[#allocation5 + $0x8] sm:$0xff]   ;;  %v243_v3 = vld [vmem:[%s209_s8] sm:$0xf] }
  0x6a   : > { %1435 = vsyncadd (%p1842_p11), [#allocation6], 4294966784  ;;  %1118 = vmatprep.subr.bf16.mxu0 %v1461_v0  ;;  %1122 = vmatprep.mubr.msk.bf16.mxu0 %vm1462_vm0, %v1461_v0  ;;  %vm265_vm1 = vcmask 261120   ;;  %v1070_v4 = vld [vmem:[%s1828_s3] ss:$0 sm:$0xff]  ;;  %s1463_s27 = smov 120  }
  0x6b   : > { %1126 = vmatprep.subr.bf16.mxu1 %v1461_v0  ;;  %1128 = vmatprep.mubr.msk.bf16.mxu1 %vm1462_vm0, %v1461_v0  ;;  %s1464_s30 = smov 96   ;;  %s1465_s5 = smov 88   ;;  %vm313_vm2 = vcmask 64512   ;;  %vm372_vm3 = vcmask 1043456   ;;  %v422_v42 = vld [vmem:[#allocation7] sm:$0xf] }
  0x6c   : > { %1119 = vmatpush3.bf16.msra.mxu0 %v1280_v1  ;;  %s1466_s6 = smov 56   ;;  %s1467_s26 = smov 64   ;;  %v586_v43 = vsel %vm372_vm3, %v422_v42, 0  ;;  %v535_v44 = vld [vmem:[#allocation7 + $0x4] sm:$0xf] }
  0x6d   : > { %1120 = vmatprep.subr.bf16.mxu0 %v1461_v0  ;;  %s1468_s10 = smov 80   ;;  %s1469_s24 = smov 112   ;;  %v540_v45 = vsel %vm372_vm3, %v535_v44, 0 }
  0x6e   : > { %s1470_s20 = smov 72   ;;  %s1471_s28 = smov 48  }
  0x6f   : > { %s1472_s11 = smov 104   ;;  %s1473_s12 = smov 40  }
  0x70   : > { %1121 = vmatpush3.bf16.msra.mxu0 %v1281_v2  ;;  %s1069_s25 = sshll.u32 %s1669_s29, 3  ;;  %s1088_s21 = sshll.u32 %s1521_s19, 7 }
  0x71   : > { %1132 = vmatprep.subr.bf16.mxu0 %v1461_v0  ;;  %s241_s23 = scalar_lea.vmem [#allocation8], %s1069_s25  ;;  %p1843_p0 = scmp.ne.s32.totalorder %s1838_s13, 0 }
  0x73   : > { %1123 = vmatmul.mubr.msk.bf16.vlgmr.msra.gmra.mrb[0].mxu0 %vm265_vm1, %v243_v3 }
  0x74   : > { %1134 = vmatprep.mubr.msk.bf16.mxu0 %vm1462_vm0, %v1461_v0 }
 0x146   : > { %v303_v5 = vpop.f32.mrb[0].mxu0 }
 0x147   : > { %v304_v6 = vadd.f32 %v1070_v4, %v303_v5  ;;  %v1124_v7 = vpop.f32.mrb[1].mxu0 }
 0x148   : > { %v306_v8 = vpop.f32.mrb[2].mxu0 }
 0x149   : > { %v1694_v9 = vpack.c.bf16 %v304_v6, %v304_v6  ;;  %v1125_v10 = vpop.f32.mrb[3].mxu0 }
 0x14b   : > { %423 = vrot.lane.b32.xlu1 %v1694_v9, %s1463_s27  ;;  %311 = vrot.lane.b32.xlu0 %v1694_v9, %s1464_s30  ;;  %s969_s27 = sshll.u32 %s241_s23, 4  ;;  %s1783_s27 = int_to_ptr.vmem [resolvable:$true] %s969_s27 }
 0x14c   : > { %s1384_s19 = scalar_lea.vmem %s1783_s27, 128 }
 0x14d   : > { %p1385_p8 = scmp.ne.s32.totalorder %s1783_s27, %s1384_s19 }
 0x14f   : > { %425 = vrot.lane.b32.xlu0 %v1694_v9, %s1465_s5  ;;  %p1386_p1 = pnand %p1385_p8, %p1843_p0 }
 0x151   : > { %p1387_p3 = pneg %p1386_p1 }
 0x1bd   : > { %v312_v11 = vpop.permute.xlu0 %311  ;;  %v424_v15 = vpop.permute.xlu1 %423 }
 0x1be   : > { %v318_v12 = vsel %vm313_vm2, %v312_v11, 0 }
 0x1bf   : > { %1127 = vmatpush3.bf16.xpose.msra.mxu1 %v318_v12 }
 0x1c0   : > { %1138 = vmatprep.subr.bf16.mxu1 %v1461_v0 }
 0x1c1   : > { %v426_v13 = vpop.permute.xlu0 %425 }
 0x1c2   : > { %v431_v14 = vsel %vm313_vm2, %v426_v13, 0 }
 0x1c6   : > { %1129 = vmatmul.mubr.msk.bf16.vlgmr.msra.gmra.mrb[0].mxu1 %vm313_vm2, %v1694_v9 }
 0x1c7   : > { %1139 = vmatpush3.bf16.xpose.msra.mxu1 %v431_v14  ;;  %1140 = vmatprep.mubr.msk.bf16.mxu1 %vm1462_vm0, %v1461_v0 }
 0x1c8   : > { %1150 = vmatprep.subr.bf16.mxu1 %v1461_v0 }
 0x1ce   : > { %1141 = vmatmul.mubr.msk.bf16.vlgmr.msra.gmra.mrb[4].mxu1 %vm313_vm2, %v424_v15 }
 0x1cf   : > { %1152 = vmatprep.mubr.msk.bf16.mxu1 %vm1462_vm0, %v1461_v0  ;;  %1151 = vmatpush3.bf16.msra.mxu1 %v540_v45 }
 0x1d0   : > { %1162 = vmatprep.subr.bf16.mxu1 %v1461_v0 }
 0x299   : > { %v354_v16 = vpop.f32.mrb[0].mxu1 }
 0x29a   : > { %v1130_v17 = vpop.f32.mrb[1].mxu1  ;;  %v360_v18 = vsel %vm313_vm2, %v354_v16, -inf }
 0x29b   : > { %361 = vmax.xlane.f32.xlu1 %v360_v18  ;;  %v357_v19 = vpop.f32.mrb[2].mxu1 }
 0x29c   : > { %v1131_v20 = vpop.f32.mrb[3].mxu1 }
 0x2a1   : > { %v467_v21 = vpop.f32.mrb[4].mxu1 }
 0x2a2   : > { %v1142_v22 = vpop.f32.mrb[5].mxu1  ;;  %v473_v23 = vsel %vm313_vm2, %v467_v21, -inf }
 0x2a3   : > { %474 = vmax.xlane.f32.xlu0 %v473_v23  ;;  %v470_v24 = vpop.f32.mrb[6].mxu1 }
 0x2a4   : > { %v1143_v25 = vpop.f32.mrb[7].mxu1 }
 0x2ac   : > { %480 = vrot.lane.b32.xlu1 %v1694_v9, %s1466_s6  ;;  %s1781_s6 = scalar_lea.hbm %s1829_s4, %s1088_s21 }
 0x2b9   : > { %367 = vrot.lane.b32.xlu0 %v1694_v9, %s1467_s26  ;;  %s956_s26 = scalar_lea.sflag [#allocation4], %s1669_s29 }
 0x2bd   : > { %630 = vrot.lane.b32.xlu0 %v1694_v9, %s1468_s10  ;;  %s1474_s10 = smov [#allocation8]  }
 0x2c1   : > { %628 = vrot.lane.b32.xlu0 %v1694_v9, %s1469_s24  ;;  %s1388_s24 = sshll.u32 %s1474_s10, 4  ;;  %s1389_s24 = int_to_ptr.vmem [resolvable:$false] %s1388_s24 }
 0x2c2   : > { %p1391_p7 = scmp.lt.s32.totalorder %s1783_s27, %s1389_s24 }
 0x328   : > { %v362_v26 = vpop.xlane.xlu1 %361 }
 0x329   : > { %v363_v27 = vsub.f32 %v354_v16, %v362_v26 }
 0x32b   : > { %v364_v28 = vmul.f32 1.442695, %v363_v27 }
 0x32c   : > { %v481_v35 = vpop.permute.xlu1 %480 }
 0x32d   : > { %1282 = vpow2.f32 %v364_v28  ;;  %v486_v38 = vsel %vm372_vm3, %v481_v35, 0  ;;  %v740_v28 = vld [vmem:[#allocation7 + $0x8] sm:$0xf] }
 0x330   : > { %v475_v29 = vpop.xlane.xlu0 %474 }
 0x331   : > { %v476_v30 = vsub.f32 %v467_v21, %v475_v29  ;;  %v745_v29 = vsel %vm372_vm3, %v740_v28, 0 }
 0x333   : > { %v477_v31 = vmul.f32 1.442695, %v476_v30 }
 0x334   : > { %v368_v32 = vpop.permute.xlu0 %367 }
 0x335   : > { %1284 = vpow2.f32 %v477_v31  ;;  %v374_v33 = vsel %vm372_vm3, %v368_v32, 0 }
 0x336   : > { %1133 = vmatpush3.bf16.msra.mxu0 %v374_v33 }
 0x337   : > { %v1283_v34 = vpop.eup %1282  ;;  %1144 = vmatprep.subr.bf16.mxu0 %v1461_v0 }
 0x338   : > { %v416_v36 = vsel %vm313_vm2, %v1283_v34, 0.0  ;;  %v366_v37 = vpack.c.bf16 %v1283_v34, %v1283_v34  ;;  %v631_v46 = vpop.permute.xlu0 %630 }
 0x339   : > { %417 = vadd.xlane.f32.xlu0 %v416_v36  ;;  %v636_v1 = vsel %vm313_vm2, %v631_v46, 0 }
 0x33a   : > { %1135 = vmatmul.mubr.msk.bf16.vlgmr.msra.gmra.mrb[4].mxu0 %vm313_vm2, %v366_v37 }
 0x33b   : > { %1145 = vmatpush3.bf16.msra.mxu0 %v486_v38  ;;  %1146 = vmatprep.mubr.msk.bf16.mxu0 %vm1462_vm0, %v1461_v0 }
 0x33c   : > { %1156 = vmatprep.subr.bf16.mxu0 %v1461_v0  ;;  %v629_v47 = vpop.permute.xlu0 %628 }
 0x33f   : > { %v1285_v39 = vpop.eup %1284 }
 0x340   : > { %v528_v40 = vsel %vm313_vm2, %v1285_v39, 0.0  ;;  %v479_v41 = vpack.c.bf16 %v1285_v39, %v1285_v39 }
 0x341   : > { %529 = vadd.xlane.f32.xlu1 %v528_v40 }
 0x342   : > { %1147 = vmatmul.mubr.msk.bf16.vlgmr.msra.gmra.mrb[8].mxu0 %vm313_vm2, %v479_v41 }
 0x343   : > { %1158 = vmatprep.mubr.msk.bf16.mxu0 %vm1462_vm0, %v1461_v0  ;;  %1157 = vmatpush3.bf16.msra.mxu0 %v586_v43 }
 0x344   : > { %1168 = vmatprep.subr.bf16.mxu0 %v1461_v0 }
 0x34f   : > { %790 = vrot.lane.b32.xlu0 %v1694_v9, %s1470_s20  ;;  %s1390_s20 = scalar_lea.vmem %s1389_s24, 256 }
 0x350   : > { %p1392_p9 = scmp.lt.s32.totalorder %s1390_s20, %s1384_s19 }
 0x352   : > { %p1393_p12 = por %p1392_p9, %p1391_p7 }
 0x354   : > { %p1394_p2 = pnand %p1393_p12, %p1387_p3 }
 0x3c6   : > { %v418_v48 = vpop.xlane.xlu0 %417 }
 0x3c7   : > { %1286 = vrcp.f32 %v418_v48 }
 0x3ca   : > { %v791_v23 = vpop.permute.xlu0 %790 }
 0x3cb   : > { %v796_v26 = vsel %vm313_vm2, %v791_v23, 0 }
 0x3ce   : > { %v530_v49 = vpop.xlane.xlu1 %529 }
 0x3cf   : > { %1288 = vrcp.f32 %v530_v49 }
 0x3d1   : > { %v1287_v50 = vpop.eup %1286 }
 0x3d9   : > { %v1289_v57 = vpop.eup %1288 }
 0x40d   : > { %v410_v51 = vpop.f32.mrb[4].mxu0 }
 0x40e   : > { %v420_v52 = vmul.f32 %v1287_v50, %v410_v51  ;;  %v1136_v53 = vpop.f32.mrb[5].mxu0 }
 0x40f   : > { %v413_v54 = vpop.f32.mrb[6].mxu0 }
 0x410   : > { %v421_v55 = vpack.c.bf16 %v420_v52, %v420_v52  ;;  %v1137_v56 = vpop.f32.mrb[7].mxu0  ;;  %v900_v54 = vld [vmem:[#allocation7 + $0xc] sm:$0xf] }
 0x412   : > { %1159 = vmatmul.mubr.msk.bf16.vlgmr.msra.gmra.mrb[12].mxu0 %vm313_vm2, %v421_v55  ;;  %v905_v55 = vsel %vm372_vm3, %v900_v54, 0 }
 0x413   : > { %1170 = vmatprep.mubr.msk.bf16.mxu0 %vm1462_vm0, %v1461_v0 }
 0x415   : > { %v522_v58 = vpop.f32.mrb[8].mxu0 }
 0x416   : > { %v532_v59 = vmul.f32 %v1289_v57, %v522_v58  ;;  %v1148_v60 = vpop.f32.mrb[9].mxu0 }
 0x417   : > { %v525_v61 = vpop.f32.mrb[10].mxu0 }
 0x418   : > { %v533_v62 = vpack.c.bf16 %v532_v59, %v532_v59  ;;  %v1149_v63 = vpop.f32.mrb[11].mxu0 }
 0x41a   : > { %1153 = vmatmul.mubr.msk.bf16.vlgmr.msra.gmra.mrb[8].mxu1 %vm313_vm2, %v533_v62 }
 0x41b   : > { %1163 = vmatpush3.bf16.xpose.msra.mxu1 %v636_v1  ;;  %1164 = vmatprep.mubr.msk.bf16.mxu1 %vm1462_vm0, %v1461_v0 }
 0x41c   : > { %1174 = vmatprep.subr.bf16.mxu1 %v1461_v0 }
 0x422   : > { %1165 = vmatmul.mubr.msk.bf16.vlgmr.msra.gmra.mrb[12].mxu1 %vm313_vm2, %v629_v47 }
 0x423   : > { %1176 = vmatprep.mubr.msk.bf16.mxu1 %vm1462_vm0, %v1461_v0  ;;  %1175 = vmatpush3.bf16.msra.mxu1 %v745_v29 }
 0x424   : > { %1186 = vmatprep.subr.bf16.mxu1 %v1461_v0 }
 0x4e5   : > { %v622_v2 = vpop.f32.mrb[12].mxu0 }
 0x4e6   : > { %v1160_v3 = vpop.f32.mrb[13].mxu0 }
 0x4e7   : > { %v625_v4 = vpop.f32.mrb[14].mxu0 }
 0x4e8   : > { %v1161_v5 = vpop.f32.mrb[15].mxu0 }
 0x4ed   : > { %v576_v6 = vpop.f32.mrb[8].mxu1 }
 0x4ee   : > { %v1744_v7 = vadd.f32 %v622_v2, %v576_v6  ;;  %v1154_v8 = vpop.f32.mrb[9].mxu1  ;;  %v1086_v2 = vld [vmem:[%s1828_s3 + $0x1] ss:$0 sm:$0xff] }
 0x4ef   : > { %v579_v10 = vpop.f32.mrb[10].mxu1 }
 0x4f0   : > { %v1155_v11 = vpop.f32.mrb[11].mxu1 }
 0x4f5   : > { %v672_v12 = vpop.f32.mrb[12].mxu1 }
 0x4f6   : > { %v1166_v13 = vpop.f32.mrb[13].mxu1  ;;  %v678_v14 = vsel %vm313_vm2, %v672_v12, -inf }
 0x4f7   : > { %679 = vmax.xlane.f32.xlu1 %v678_v14  ;;  %v675_v15 = vpop.f32.mrb[14].mxu1 }
 0x4f8   : > { %v1167_v16 = vpop.f32.mrb[15].mxu1 }
 0x508   : > { %685 = vrot.lane.b32.xlu1 %v1694_v9, %s1471_s28 }
 0x50c   : > { %788 = vrot.lane.b32.xlu1 %v1694_v9, %s1472_s11 }
 0x584   : > { %v680_v17 = vpop.xlane.xlu1 %679 }
 0x585   : > { %v681_v18 = vsub.f32 %v672_v12, %v680_v17 }
 0x587   : > { %v682_v19 = vmul.f32 1.442695, %v681_v18 }
 0x588   : > { %v686_v20 = vpop.permute.xlu1 %685 }
 0x589   : > { %1290 = vpow2.f32 %v682_v19  ;;  %v691_v21 = vsel %vm372_vm3, %v686_v20, 0 }
 0x58a   : > { %1169 = vmatpush3.bf16.msra.mxu0 %v691_v21 }
 0x58b   : > { %1180 = vmatprep.subr.bf16.mxu0 %v1461_v0 }
 0x58c   : > { %v789_v27 = vpop.permute.xlu1 %788 }
 0x593   : > { %v1291_v22 = vpop.eup %1290 }
 0x594   : > { %v733_v24 = vsel %vm313_vm2, %v1291_v22, 0.0  ;;  %v684_v25 = vpack.c.bf16 %v1291_v22, %v1291_v22 }
 0x595   : > { %734 = vadd.xlane.f32.xlu1 %v733_v24 }
 0x596   : > { %1171 = vmatmul.mubr.msk.bf16.vlgmr.msra.gmra.mrb[16].mxu0 %vm313_vm2, %v684_v25 }
 0x597   : > { %1181 = vmatpush3.bf16.xpose.msra.mxu0 %v796_v26  ;;  %1182 = vmatprep.mubr.msk.bf16.mxu0 %vm1462_vm0, %v1461_v0 }
 0x598   : > { %1192 = vmatprep.subr.bf16.mxu0 %v1461_v0 }
 0x59e   : > { %1183 = vmatmul.mubr.msk.bf16.vlgmr.msra.gmra.mrb[20].mxu0 %vm313_vm2, %v789_v27 }
 0x59f   : > { %1194 = vmatprep.mubr.msk.bf16.mxu0 %vm1462_vm0, %v1461_v0  ;;  %1193 = vmatpush3.bf16.msra.mxu0 %v905_v55 }
 0x622   : > { %v735_v30 = vpop.xlane.xlu1 %734 }
 0x623   : > { %1292 = vrcp.f32 %v735_v30 }
 0x62d   : > { %v1293_v31 = vpop.eup %1292 }
 0x669   : > { %v727_v32 = vpop.f32.mrb[16].mxu0 }
 0x66a   : > { %v737_v33 = vmul.f32 %v1293_v31, %v727_v32  ;;  %v1172_v34 = vpop.f32.mrb[17].mxu0 }
 0x66b   : > { %v730_v35 = vpop.f32.mrb[18].mxu0 }
 0x66c   : > { %v738_v36 = vpack.c.bf16 %v737_v33, %v737_v33  ;;  %v1173_v37 = vpop.f32.mrb[19].mxu0 }
 0x66e   : > { %1177 = vmatmul.mubr.msk.bf16.vlgmr.msra.gmra.mrb[16].mxu1 %vm313_vm2, %v738_v36 }
 0x66f   : > { %1188 = vmatprep.mubr.msk.bf16.mxu1 %vm1462_vm0, %v1461_v0 }
 0x671   : > { %v832_v38 = vpop.f32.mrb[20].mxu0 }
 0x672   : > { %v1184_v39 = vpop.f32.mrb[21].mxu0  ;;  %v838_v40 = vsel %vm313_vm2, %v832_v38, -inf }
 0x673   : > { %839 = vmax.xlane.f32.xlu0 %v838_v40  ;;  %v835_v41 = vpop.f32.mrb[22].mxu0 }
 0x674   : > { %v1185_v42 = vpop.f32.mrb[23].mxu0 }
 0x689   : > { %845 = vrot.lane.b32.xlu0 %v1694_v9, %s1473_s12 }
 0x700   : > { %v840_v43 = vpop.xlane.xlu0 %839 }
 0x701   : > { %v841_v44 = vsub.f32 %v832_v38, %v840_v43 }
 0x703   : > { %v842_v45 = vmul.f32 1.442695, %v841_v44 }
 0x704   : > { %v846_v46 = vpop.permute.xlu0 %845 }
 0x705   : > { %1294 = vpow2.f32 %v842_v45  ;;  %v851_v47 = vsel %vm372_vm3, %v846_v46, 0 }
 0x706   : > { %1187 = vmatpush3.bf16.msra.mxu1 %v851_v47 }
 0x70f   : > { %v1295_v48 = vpop.eup %1294 }
 0x710   : > { %v893_v0 = vsel %vm313_vm2, %v1295_v48, 0.0  ;;  %v844_v49 = vpack.c.bf16 %v1295_v48, %v1295_v48 }
 0x711   : > { %894 = vadd.xlane.f32.xlu1 %v893_v0 }
 0x712   : > { %1189 = vmatmul.mubr.msk.bf16.vlgmr.msra.gmra.mrb[20].mxu1 %vm313_vm2, %v844_v49 }
 0x741   : > { %v781_v50 = vpop.f32.mrb[16].mxu1 }
 0x742   : > { %v787_v51 = vadd.f32 %v781_v50, %v1744_v7  ;;  %v1178_v52 = vpop.f32.mrb[17].mxu1 }
 0x743   : > { %v784_v9 = vpop.f32.mrb[18].mxu1 }
 0x744   : > { %v1179_v53 = vpop.f32.mrb[19].mxu1 }
 0x79e   : > { %v895_v56 = vpop.xlane.xlu1 %894 }
 0x79f   : > { %1296 = vrcp.f32 %v895_v56 }
 0x7a9   : > { %v1297_v57 = vpop.eup %1296 }
 0x7e5   : > { %v887_v58 = vpop.f32.mrb[20].mxu1 }
 0x7e6   : > { %v897_v59 = vmul.f32 %v1297_v57, %v887_v58  ;;  %v1190_v60 = vpop.f32.mrb[21].mxu1 }
 0x7e7   : > { %v890_v61 = vpop.f32.mrb[22].mxu1 }
 0x7e8   : > { %v898_v62 = vpack.c.bf16 %v897_v59, %v897_v59  ;;  %v1191_v63 = vpop.f32.mrb[23].mxu1 }
 0x7ea   : > { %1195 = vmatmul.mubr.msk.bf16.vlgmr.msra.gmra.mrb[24].mxu0 %vm313_vm2, %v898_v62 }
 0x8bd   : > { %v941_v1 = vpop.f32.mrb[24].mxu0 }
 0x8be   : > { %v947_v3 = vadd.f32 %v941_v1, %v787_v51  ;;  %v1196_v4 = vpop.f32.mrb[25].mxu0 }
 0x8bf   : > { %v944_v5 = vpop.f32.mrb[26].mxu0 }
 0x8c0   : > { %v953_v6 = vadd.f32 %v1086_v2, %v947_v3  ;;  %v1197_v7 = vpop.f32.mrb[27].mxu0 }
 0x8c2   : > { %954 = vst [vmem:[%s241_s23] sm:$0xff] %v953_v6 }
 0x8c3   : > { %1397 = shalt.err (!%p1394_p2)
}
 0x8c4   : > { %s1398_s29 = scalar_lea.hbm %s1781_s6, 128  ;;  %s1402_s12 = scalar_lea.hbm %s1829_s4, 256 }
 0x8c5   : > { %p1399_p13 = scmp.ne.s32.totalorder %s1781_s6, %s1398_s29  ;;  %p1403_p4 = scmp.lt.u32.totalorder %s1781_s6, %s1829_s4 }
 0x8c6   : > { %p1404_p5 = scmp.lt.u32.totalorder %s1402_s12, %s1398_s29  ;;  %p1406_p8 = scmp.lt.u32.totalorder %s1398_s29, %s1781_s6 }
 0x8c7   : > { %p1400_p6 = pnand %p1399_p13, %p1843_p0 }
 0x8c8   : > { %p1405_p11 = por %p1404_p5, %p1403_p4 }
 0x8c9   : > { %p1401_p10 = pneg %p1400_p6 }
 0x8ca   : > { %p1407_p1 = por %p1406_p8, %p1405_p11 }
 0x8cc   : > { %p1408_p3 = pnand %p1407_p1, %p1401_p10 }
 0x8ce   : > { %1411 = shalt.err (!%p1408_p3)
}
 0x8cf   : > { %1208 = dma.vmem_to_hbm [thread:$0]  (%p1843_p0), %s1783_s27, 128, %s1781_s6, %s956_s26  }
 0x8d0 PF: > { %s981_s8 = sand.u32 1, %s1442_s15   ;;  %p1844_p7 = scmp.ne.s32.totalorder %s1834_s22, 0 }
 0x8d1   : > { %p1845_p9 = scmp.ge.s32.totalorder %s1454_s18, 2  ;;  %s982_s21 = scalar_lea.sflag [#allocation4], %s981_s8 }
 0x8d3   : > { %p1222_p12 = pnand %p1845_p9, %p1844_p7 }
 0x8d5   : > { %1437 = dma.done.wait (!%p1222_p12), %s982_s21, 128  }
 0x8d6   : > { %1439 = vsyncadd (!%p1222_p12), %s982_s21, 4294967168  ;;  %p18_p2 = scmp.ge.s32.totalorder %s1610_s9, 4   ;;  %s1846_s15 = smov %s1446_s16 }
 0x8d7   : > { %s1847_s16 = smov %s1450_s17  ;;  %s1848_s17 = smov %s1626_s14 }
 0x8d8   : > { %s1849_s18 = smov %s1610_s9  ;;  %20 = sbr.rel (!%p18_p2) target bundleno = 6 (0x6), region = 92 }
 0x8df   :  { %987 = vsyncpa [#allocation3], 1 }
 0x8e0   :  { %989 = vsyncpa [#allocation3 + $0x1], 1 }
 0x8e1   :  { %990 = vsyncpa [#allocation6], 1 }
 0x8e2   :  { %991 = vsyncpa [#allocation4], 1 }
 0x8e3   :  { %993 = vsyncpa [#allocation4 + $0x1], 1 }

</bundles_post_ra>
